<compile_context>
chip_gen: v7x
topology: tpu7x:2x2x1
jax: 0.10.0
libtpu: 0.0.40
codegen_flags: <defaults>
</compile_context>

<pallas_src>
import math
import numpy as np
import jax
import jax.numpy as jnp
from jax import lax
from jax.experimental import pallas as pl
from jax.experimental.pallas import tpu as pltpu

BN_EPS = 1e-5


# ----------------------------------------------------------------------------
# Pallas kernel: one pyramid level, fully fused, lane-flattened (H, W*C)
# ----------------------------------------------------------------------------
def _level_kernel(x_ref, y_ref, uh_ref, uw_ref, sh_ref, m_ref, bias_ref, o_ref):
    f32 = jnp.float32
    x = x_ref[0]                       # (Hs, Ws*C)  coarse input
    y = y_ref[0]                       # (H,  W*C)   skip input

    # bilinear upsample (align_corners=False, matches F.upsample) of x to
    # y's spatial size, as two small constant matmuls (separable resize).
    xu = jnp.dot(jnp.dot(uh_ref[...], x, preferred_element_type=f32),
                 uw_ref[...], preferred_element_type=f32)
    z = xu + y                         # fused _upsample_add, lane-dense

    # depthwise 3x3 (pad 1) composed with 1x1 conv and BN scale:
    #   out = sum_dy  row_shift_dy(z) @ M_dy
    # where M_dy is banded over W with (C, C) blocks dw[dy,dx]*pw*scale and the
    # row-shift matrices have zero boundary rows (== zero padding in H/W).
    acc = jnp.dot(z, m_ref[1], preferred_element_type=f32)                  # dy=1
    acc = acc + jnp.dot(jnp.dot(sh_ref[0], z, preferred_element_type=f32),
                        m_ref[0], preferred_element_type=f32)               # dy=0
    acc = acc + jnp.dot(jnp.dot(sh_ref[1], z, preferred_element_type=f32),
                        m_ref[2], preferred_element_type=f32)               # dy=2

    # BN bias + ReLU, single lane-dense store
    o_ref[0] = jnp.maximum(acc + bias_ref[...], 0.0)


def fused_level(x, y, uh, uw_big, sh, m, bias_row):
    """x: (B, Hs, Ws*C); y: (B, H, W*C). Returns (B, H, W*C)."""
    B, Hs, WsC = x.shape
    _, H, WC = y.shape
    # TODO(synk): at production FPEM shapes (C=128, large H) add an H-row
    # tiling grid axis + vmem_limit_bytes; unnecessary at these toy sizes.
    return pl.pallas_call(
        _level_kernel,
        out_shape=jax.ShapeDtypeStruct((B, H, WC), jnp.float32),
        grid=(B,),
        in_specs=[
            pl.BlockSpec((1, Hs, WsC), lambda b: (b, 0, 0)),
            pl.BlockSpec((1, H, WC), lambda b: (b, 0, 0)),
            pl.BlockSpec((H, Hs), lambda b: (0, 0)),
            pl.BlockSpec((WsC, WC), lambda b: (0, 0)),
            pl.BlockSpec((2, H, H), lambda b: (0, 0, 0)),
            pl.BlockSpec((3, WC, WC), lambda b: (0, 0, 0)),
            pl.BlockSpec((1, WC), lambda b: (0, 0)),
        ],
        out_specs=pl.BlockSpec((1, H, WC), lambda b: (b, 0, 0)),
        compiler_params=pltpu.CompilerParams(
            dimension_semantics=("parallel",)),   # B=2 parallel steps (v7x 2 TCs)
    )(x, y, uh, uw_big, sh, m, bias_row)


# ----------------------------------------------------------------------------
# Constant-matrix construction (host/XLA glue; shapes are tiny)
# ----------------------------------------------------------------------------
def _bilinear_matrix(out_sz, in_sz):
    """(out_sz, in_sz) matrix implementing torch bilinear resize along one axis
    (align_corners=False, with the source-index clamp to >= 0)."""
    if out_sz == in_sz:
        return np.eye(out_sz, dtype=np.float32)
    scale = in_sz / out_sz
    src = (np.arange(out_sz, dtype=np.float64) + 0.5) * scale - 0.5
    src = np.maximum(src, 0.0)
    i0 = np.clip(np.floor(src).astype(np.int64), 0, in_sz - 1)
    i1 = np.clip(i0 + 1, 0, in_sz - 1)
    frac = (src - i0).astype(np.float32)
    m = np.zeros((out_sz, in_sz), dtype=np.float32)
    rows = np.arange(out_sz)
    np.add.at(m, (rows, i0), (1.0 - frac).astype(np.float32))
    np.add.at(m, (rows, i1), frac)
    return m


def _shift_matrices(H):
    # sdn @ z -> row h gets z[h-1] (row 0 zero): the dy=0 tap with zero pad.
    # sup @ z -> row h gets z[h+1] (row H-1 zero): the dy=2 tap with zero pad.
    sdn = np.eye(H, k=-1, dtype=np.float32)
    sup = np.eye(H, k=1, dtype=np.float32)
    return np.stack([sdn, sup]).astype(np.float32)


def _build_level_constants(src_hw, dst_hw, C, p):
    Hs, Ws = src_hw
    H, W = dst_hw
    uh = jnp.asarray(_bilinear_matrix(H, Hs))                            # (H, Hs)
    uw = _bilinear_matrix(W, Ws)                                         # (W, Ws)
    uw_big = jnp.asarray(np.kron(uw.T, np.eye(C, dtype=np.float32)))     # (Ws*C, W*C)
    sh = jnp.asarray(_shift_matrices(H))                                 # (2, H, H)

    dw = p["dw"]                                      # (3, 3, C) depthwise taps
    pw_s = p["pw"] * p["scale"][0][None, :]           # BN scale folded into 1x1 conv
    bands = [np.eye(W, k=1 - dx, dtype=np.float32) for dx in range(3)]
    m_rows = []
    for dy in range(3):
        m_dy = jnp.zeros((W * C, W * C), jnp.float32)
        for dx in range(3):
            k_cc = dw[dy, dx][:, None] * pw_s                            # (C, C)
            m_dy = m_dy + jnp.kron(jnp.asarray(bands[dx]), k_cc)
        m_rows.append(m_dy)
    m = jnp.stack(m_rows)                                                # (3, WC, WC)
    bias_row = jnp.tile(p["bias"][0], W).reshape(1, W * C)
    return uh, uw_big, sh, m, bias_row


# ----------------------------------------------------------------------------
# Parameters (deterministic, mirrors module __init__ shapes; BN in eval mode)
# ----------------------------------------------------------------------------
def init_params(key, planes):
    params = {}
    for name in ("1_1", "2_1", "3_1"):
        key, k_dw, k_pw = jax.random.split(key, 3)
        dw = jax.random.normal(k_dw, (3, 3, planes), jnp.float32) * math.sqrt(2.0 / (9 * planes))
        pw = jax.random.normal(k_pw, (planes, planes), jnp.float32) * math.sqrt(2.0 / planes)
        gamma = jnp.ones((planes,), jnp.float32)
        beta = jnp.zeros((planes,), jnp.float32)
        mean = jnp.zeros((planes,), jnp.float32)
        var = jnp.ones((planes,), jnp.float32)
        scale = gamma / jnp.sqrt(var + BN_EPS)
        bias = beta - mean * scale
        params[name] = dict(dw=dw, pw=pw,
                            scale=scale.reshape(1, planes),
                            bias=bias.reshape(1, planes))
    # TODO(synk): dwconv4_1/smooth_layer4_1 and all *_2 layers exist in
    # __init__ but are never used in forward; not instantiated here.
    return params


# ----------------------------------------------------------------------------
# FPEM_v2 forward (external interface is NCHW, like PyTorch)
# ----------------------------------------------------------------------------
def _to_flat(t):
    B, C, H, W = t.shape
    return jnp.transpose(t, (0, 2, 3, 1)).reshape(B, H, W * C).astype(jnp.float32)


def _from_flat(t, hwc):
    H, W, C = hwc
    B = t.shape[0]
    return jnp.transpose(t.reshape(B, H, W, C), (0, 3, 1, 2))


def fpem_v2_forward(f1, f2, f3, f4, f5, params):
    feats = (f1, f2, f3, f4, f5)
    hwcs = [(t.shape[2], t.shape[3], t.shape[1]) for t in feats]   # (H, W, C)
    g1, g2, g3, g4, g5 = (_to_flat(t) for t in feats)

    def level(x_flat, src_hwc, y_flat, dst_hwc, p):
        consts = _build_level_constants(src_hwc[:2], dst_hwc[:2], dst_hwc[2], p)
        return fused_level(x_flat, y_flat, *consts)

    g4_ = level(g5, hwcs[4], g4, hwcs[3], params["3_1"])   # f4_ reuses level-3 weights
    g3_ = level(g4_, hwcs[3], g3, hwcs[2], params["3_1"])
    g2_ = level(g3_, hwcs[2], g2, hwcs[1], params["2_1"])
    g1_ = level(g2_, hwcs[1], g1, hwcs[0], params["1_1"])

    return (_from_flat(g1_, hwcs[0]), _from_flat(g2_, hwcs[1]),
            _from_flat(g3_, hwcs[2]), _from_flat(g4_, hwcs[3]), f5)


# ----------------------------------------------------------------------------
# Pure-JAX reference (HIGHEST precision) for correctness checking
# ----------------------------------------------------------------------------
def bilinear_resize_nhwc(x, out_h, out_w):
    B, H, W, C = x.shape
    if (H, W) == (out_h, out_w):
        return x

    def coords(out_sz, in_sz):
        scale = in_sz / out_sz
        src = (jnp.arange(out_sz, dtype=jnp.float32) + 0.5) * scale - 0.5
        src = jnp.maximum(src, 0.0)
        i0 = jnp.clip(jnp.floor(src).astype(jnp.int32), 0, in_sz - 1)
        i1 = jnp.clip(i0 + 1, 0, in_sz - 1)
        frac = src - i0.astype(jnp.float32)
        return i0, i1, frac

    hi0, hi1, hf = coords(out_h, H)
    wi0, wi1, wf = coords(out_w, W)
    x00 = x[:, hi0][:, :, wi0]
    x01 = x[:, hi0][:, :, wi1]
    x10 = x[:, hi1][:, :, wi0]
    x11 = x[:, hi1][:, :, wi1]
    wf_ = wf[None, None, :, None]
    hf_ = hf[None, :, None, None]
    top = x00 * (1.0 - wf_) + x01 * wf_
    bot = x10 * (1.0 - wf_) + x11 * wf_
    return top * (1.0 - hf_) + bot * hf_


def _ref_level(x, y, p):
    B, H, W, C = y.shape
    z = bilinear_resize_nhwc(x, H, W) + y
    dwk = p["dw"].reshape(3, 3, 1, C)
    z = lax.conv_general_dilated(z, dwk, (1, 1), ((1, 1), (1, 1)),
                                 dimension_numbers=("NHWC", "HWIO", "NHWC"),
                                 feature_group_count=C,
                                 precision=lax.Precision.HIGHEST)
    out = jnp.einsum("bhwc,cd->bhwd", z, p["pw"], precision=lax.Precision.HIGHEST)
    out = out * p["scale"].reshape(1, 1, 1, C) + p["bias"].reshape(1, 1, 1, C)
    return jnp.maximum(out, 0.0)


if __name__ == "__main__":
    key = jax.random.PRNGKey(0)
    B, C = 2, 8  # out_channels (planes) = 8
    shapes = {
        "f1": (B, C, 32, 32),
        "f2": (B, C, 16, 16),
        "f3": (B, C, 8, 8),
        "f4": (B, C, 4, 4),
        "f5": (B, C, 2, 2),
    }
    key, *ks = jax.random.split(key, len(shapes) + 1)
    feats = {n: jax.random.normal(k, s, jnp.float32)
             for (n, s), k in zip(shapes.items(), ks)}
    key, pk = jax.random.split(key)
    params = init_params(pk, C)

    outs = fpem_v2_forward(feats["f1"], feats["f2"], feats["f3"],
                           feats["f4"], feats["f5"], params)
    outs = jax.block_until_ready(outs)

    # reference check against HIGHEST-precision pure JAX. Kernel matmuls run at
    # default MXU precision (bf16 passes, per perf feedback), so the tolerance
    # is sized for that rounding (outputs are O(1)).
    to_nhwc = lambda t: jnp.transpose(t, (0, 2, 3, 1))
    to_nchw = lambda t: jnp.transpose(t, (0, 3, 1, 2))
    g = {n: to_nhwc(feats[n]) for n in feats}
    r4 = _ref_level(g["f5"], g["f4"], params["3_1"])
    r3 = _ref_level(r4, g["f3"], params["3_1"])
    r2 = _ref_level(r3, g["f2"], params["2_1"])
    r1 = _ref_level(r2, g["f1"], params["1_1"])
    refs = tuple(map(to_nchw, (r1, r2, r3, r4, g["f5"])))
    for o, r in zip(outs, refs):
        np.testing.assert_allclose(np.asarray(o), np.asarray(r),
                                   rtol=5e-2, atol=5e-2)
    print("KERNEL_OK")
</pallas_src>

<mosaic_0001>
module attributes {stable_mosaic.version = 11 : i64} {
  func.func @_level_kernel(%arg0: i32, %arg1: memref<1x2x16xf32, #tpu.memory_space<vmem>>, %arg2: memref<1x4x32xf32, #tpu.memory_space<vmem>>, %arg3: memref<4x2xf32, #tpu.memory_space<vmem>>, %arg4: memref<16x32xf32, #tpu.memory_space<vmem>>, %arg5: memref<2x4x4xf32, #tpu.memory_space<vmem>>, %arg6: memref<3x32x32xf32, #tpu.memory_space<vmem>>, %arg7: memref<1x32xf32, #tpu.memory_space<vmem>>, %arg8: memref<1x4x32xf32, #tpu.memory_space<vmem>>) attributes {dimension_semantics = [#tpu.dimension_semantics<parallel>], iteration_bounds = array<i64: 2>, scalar_prefetch = 0 : i64, scratch_operands = 0 : i64, tpu.core_type = #tpu.core_type<tc>, window_params = [{transform_indices = @transform_0, window_bounds = array<i64: 1, 2, 16>}, {transform_indices = @transform_1, window_bounds = array<i64: 1, 4, 32>}, {pipeline_mode = #tpu.pipeline_mode<synchronous>, transform_indices = @transform_2, window_bounds = array<i64: 4, 2>}, {pipeline_mode = #tpu.pipeline_mode<synchronous>, transform_indices = @transform_3, window_bounds = array<i64: 16, 32>}, {pipeline_mode = #tpu.pipeline_mode<synchronous>, transform_indices = @transform_4, window_bounds = array<i64: 2, 4, 4>}, {pipeline_mode = #tpu.pipeline_mode<synchronous>, transform_indices = @transform_5, window_bounds = array<i64: 3, 32, 32>}, {pipeline_mode = #tpu.pipeline_mode<synchronous>, transform_indices = @transform_6, window_bounds = array<i64: 1, 32>}, {transform_indices = @transform_7, window_bounds = array<i64: 1, 4, 32>}]} {
    %c0 = arith.constant 0 : index
    %c0_0 = arith.constant 0 : index
    %c0_1 = arith.constant 0 : index
    %0 = vector.load %arg1[%c0, %c0_0, %c0_1] : memref<1x2x16xf32, #tpu.memory_space<vmem>>, vector<1x2x16xf32>
    %1 = vector.shape_cast %0 : vector<1x2x16xf32> to vector<2x16xf32>
    %c0_2 = arith.constant 0 : index
    %c0_3 = arith.constant 0 : index
    %c0_4 = arith.constant 0 : index
    %2 = vector.load %arg2[%c0_2, %c0_3, %c0_4] : memref<1x4x32xf32, #tpu.memory_space<vmem>>, vector<1x4x32xf32>
    %3 = vector.shape_cast %2 : vector<1x4x32xf32> to vector<4x32xf32>
    %c0_5 = arith.constant 0 : index
    %c0_6 = arith.constant 0 : index
    %4 = vector.load %arg3[%c0_5, %c0_6] : memref<4x2xf32, #tpu.memory_space<vmem>>, vector<4x2xf32>
    %cst = arith.constant dense<0.000000e+00> : vector<4x16xf32>
    %5 = tpu.matmul %4, %1, %cst {dimension_numbers = #tpu.dot_dimension_numbers<[1], [0], [0], [1], [0, 0, 1, 1], [], []>} : vector<4x2xf32>, vector<2x16xf32>, vector<4x16xf32> -> vector<4x16xf32>
    %c0_7 = arith.constant 0 : index
    %c0_8 = arith.constant 0 : index
    %6 = vector.load %arg4[%c0_7, %c0_8] : memref<16x32xf32, #tpu.memory_space<vmem>>, vector<16x32xf32>
    %cst_9 = arith.constant dense<0.000000e+00> : vector<4x32xf32>
    %7 = tpu.matmul %5, %6, %cst_9 {dimension_numbers = #tpu.dot_dimension_numbers<[1], [0], [0], [1], [0, 0, 1, 1], [], []>} : vector<4x16xf32>, vector<16x32xf32>, vector<4x32xf32> -> vector<4x32xf32>
    %8 = arith.addf %7, %3 : vector<4x32xf32>
    %c1 = arith.constant 1 : index
    %c0_10 = arith.constant 0 : index
    %c0_11 = arith.constant 0 : index
    %9 = vector.load %arg6[%c1, %c0_10, %c0_11] : memref<3x32x32xf32, #tpu.memory_space<vmem>>, vector<1x32x32xf32>
    %10 = vector.shape_cast %9 : vector<1x32x32xf32> to vector<32x32xf32>
    %cst_12 = arith.constant dense<0.000000e+00> : vector<4x32xf32>
    %11 = tpu.matmul %8, %10, %cst_12 {dimension_numbers = #tpu.dot_dimension_numbers<[1], [0], [0], [1], [0, 0, 1, 1], [], []>} : vector<4x32xf32>, vector<32x32xf32>, vector<4x32xf32> -> vector<4x32xf32>
    %c0_13 = arith.constant 0 : index
    %c0_14 = arith.constant 0 : index
    %c0_15 = arith.constant 0 : index
    %12 = vector.load %arg5[%c0_13, %c0_14, %c0_15] : memref<2x4x4xf32, #tpu.memory_space<vmem>>, vector<1x4x4xf32>
    %13 = vector.shape_cast %12 : vector<1x4x4xf32> to vector<4x4xf32>
    %cst_16 = arith.constant dense<0.000000e+00> : vector<4x32xf32>
    %14 = tpu.matmul %13, %8, %cst_16 {dimension_numbers = #tpu.dot_dimension_numbers<[1], [0], [0], [1], [0, 0, 1, 1], [], []>} : vector<4x4xf32>, vector<4x32xf32>, vector<4x32xf32> -> vector<4x32xf32>
    %c0_17 = arith.constant 0 : index
    %c0_18 = arith.constant 0 : index
    %c0_19 = arith.constant 0 : index
    %15 = vector.load %arg6[%c0_17, %c0_18, %c0_19] : memref<3x32x32xf32, #tpu.memory_space<vmem>>, vector<1x32x32xf32>
    %16 = vector.shape_cast %15 : vector<1x32x32xf32> to vector<32x32xf32>
    %cst_20 = arith.constant dense<0.000000e+00> : vector<4x32xf32>
    %17 = tpu.matmul %14, %16, %cst_20 {dimension_numbers = #tpu.dot_dimension_numbers<[1], [0], [0], [1], [0, 0, 1, 1], [], []>} : vector<4x32xf32>, vector<32x32xf32>, vector<4x32xf32> -> vector<4x32xf32>
    %18 = arith.addf %11, %17 : vector<4x32xf32>
    %c1_21 = arith.constant 1 : index
    %c0_22 = arith.constant 0 : index
    %c0_23 = arith.constant 0 : index
    %19 = vector.load %arg5[%c1_21, %c0_22, %c0_23] : memref<2x4x4xf32, #tpu.memory_space<vmem>>, vector<1x4x4xf32>
    %20 = vector.shape_cast %19 : vector<1x4x4xf32> to vector<4x4xf32>
    %cst_24 = arith.constant dense<0.000000e+00> : vector<4x32xf32>
    %21 = tpu.matmul %20, %8, %cst_24 {dimension_numbers = #tpu.dot_dimension_numbers<[1], [0], [0], [1], [0, 0, 1, 1], [], []>} : vector<4x4xf32>, vector<4x32xf32>, vector<4x32xf32> -> vector<4x32xf32>
    %c2 = arith.constant 2 : index
    %c0_25 = arith.constant 0 : index
    %c0_26 = arith.constant 0 : index
    %22 = vector.load %arg6[%c2, %c0_25, %c0_26] : memref<3x32x32xf32, #tpu.memory_space<vmem>>, vector<1x32x32xf32>
    %23 = vector.shape_cast %22 : vector<1x32x32xf32> to vector<32x32xf32>
    %cst_27 = arith.constant dense<0.000000e+00> : vector<4x32xf32>
    %24 = tpu.matmul %21, %23, %cst_27 {dimension_numbers = #tpu.dot_dimension_numbers<[1], [0], [0], [1], [0, 0, 1, 1], [], []>} : vector<4x32xf32>, vector<32x32xf32>, vector<4x32xf32> -> vector<4x32xf32>
    %25 = arith.addf %18, %24 : vector<4x32xf32>
    %c0_28 = arith.constant 0 : index
    %c0_29 = arith.constant 0 : index
    %26 = vector.load %arg7[%c0_28, %c0_29] : memref<1x32xf32, #tpu.memory_space<vmem>>, vector<1x32xf32>
    %27 = vector.broadcast %26 : vector<1x32xf32> to vector<4x32xf32>
    %28 = arith.addf %25, %27 : vector<4x32xf32>
    %cst_30 = arith.constant 0.000000e+00 : f32
    %29 = vector.broadcast %cst_30 : f32 to vector<4x32xf32>
    %30 = arith.maximumf %28, %29 : vector<4x32xf32>
    %c0_31 = arith.constant 0 : index
    %c0_32 = arith.constant 0 : index
    %c0_33 = arith.constant 0 : index
    %31 = vector.load %arg8[%c0_31, %c0_32, %c0_33] : memref<1x4x32xf32, #tpu.memory_space<vmem>>, vector<1x4x32xf32>
    %32 = vector.shape_cast %31 : vector<1x4x32xf32> to vector<4x32xf32>
    %33 = vector.shape_cast %30 : vector<4x32xf32> to vector<1x4x32xf32>
    tpu.vector_store %arg8[%c0_31, %c0_32, %c0_33], %33 {strides = array<i32>} : memref<1x4x32xf32, #tpu.memory_space<vmem>>, vector<1x4x32xf32>,
    return
  }
  func.func @transform_0(%arg0: i32) -> (i32, i32, i32) {
    %c0_i32 = arith.constant 0 : i32
    %c0_i32_0 = arith.constant 0 : i32
    %c0_i32_1 = arith.constant 0 : i32
    return %arg0, %c0_i32, %c0_i32_0 : i32, i32, i32
  }
  func.func @transform_1(%arg0: i32) -> (i32, i32, i32) {
    %c0_i32 = arith.constant 0 : i32
    %c0_i32_0 = arith.constant 0 : i32
    %c0_i32_1 = arith.constant 0 : i32
    return %arg0, %c0_i32, %c0_i32_0 : i32, i32, i32
  }
  func.func @transform_2(%arg0: i32) -> (i32, i32) {
    %c0_i32 = arith.constant 0 : i32
    %c0_i32_0 = arith.constant 0 : i32
    %c0_i32_1 = arith.constant 0 : i32
    return %c0_i32, %c0_i32_0 : i32, i32
  }
  func.func @transform_3(%arg0: i32) -> (i32, i32) {
    %c0_i32 = arith.constant 0 : i32
    %c0_i32_0 = arith.constant 0 : i32
    %c0_i32_1 = arith.constant 0 : i32
    return %c0_i32, %c0_i32_0 : i32, i32
  }
  func.func @transform_4(%arg0: i32) -> (i32, i32, i32) {
    %c0_i32 = arith.constant 0 : i32
    %c0_i32_0 = arith.constant 0 : i32
    %c0_i32_1 = arith.constant 0 : i32
    %c0_i32_2 = arith.constant 0 : i32
    return %c0_i32, %c0_i32_0, %c0_i32_1 : i32, i32, i32
  }
  func.func @transform_5(%arg0: i32) -> (i32, i32, i32) {
    %c0_i32 = arith.constant 0 : i32
    %c0_i32_0 = arith.constant 0 : i32
    %c0_i32_1 = arith.constant 0 : i32
    %c0_i32_2 = arith.constant 0 : i32
    return %c0_i32, %c0_i32_0, %c0_i32_1 : i32, i32, i32
  }
  func.func @transform_6(%arg0: i32) -> (i32, i32) {
    %c0_i32 = arith.constant 0 : i32
    %c0_i32_0 = arith.constant 0 : i32
    %c0_i32_1 = arith.constant 0 : i32
    return %c0_i32, %c0_i32_0 : i32, i32
  }
  func.func @transform_7(%arg0: i32) -> (i32, i32, i32) {
    %c0_i32 = arith.constant 0 : i32
    %c0_i32_0 = arith.constant 0 : i32
    %c0_i32_1 = arith.constant 0 : i32
    return %arg0, %c0_i32, %c0_i32_0 : i32, i32, i32
  }
}

</mosaic_0001>

<bundles_post_ra>
// kernel: tpu_custom_call.1
= control target key start
LH: loop header
LB: loop body
LE: loop exit
PB: predicated region body
PF: predicated region fallthrough
CT: control target
= control target key end

     0   :  { %s1816_s0 = inlined_call_operand.hbm [shape: f32[2,2,16], index: 0, kind: input, shape index: {}]   ;;  %s1817_s1 = inlined_call_operand.hbm [shape: f32[2,4,32], index: 1, kind: input, shape index: {}]   ;;  %s1818_s2 = inlined_call_operand.vmem [shape: f32[4,2], index: 2, kind: input, shape index: {}]   ;;  %s1819_s3 = inlined_call_operand.vmem [shape: f32[16,32], index: 3, kind: input, shape index: {}]   ;;  %s1820_s4 = inlined_call_operand.hbm [shape: f32[2,4,4], index: 4, kind: input, shape index: {}]   ;;  %s1821_s5 = inlined_call_operand.hbm [shape: f32[3,32,32], index: 5, kind: input, shape index: {}]   ;;  %s1822_s6 = inlined_call_operand.vmem [shape: f32[1,32], index: 6, kind: input, shape index: {}]   ;;  %s1823_s7 = inlined_call_operand.hbm [shape: f32[2,4,32], index: 7, kind: output, shape index: {}]  }
   0x1   :  { %1828 = sst [smem:[#allocation16_spill]] %s1816_s0 }
   0x2   :  { %1829 = sst [smem:[#allocation17_spill]] %s1820_s4 }
   0x3   :  { %1830 = sst [smem:[#allocation18_spill]] %s1821_s5 }
   0x4   :  { %12 = vsyncpa [#allocation3], 0 }
   0x5   :  { %14 = vsyncpa [#allocation3 + $0x1], 0 }
   0x6   :  { %15 = vsyncpa [#allocation6], 0 }
   0x7   :  { %17 = vsyncpa [#allocation6 + $0x1], 0 }
   0x8   :  { %18 = vsyncpa [#allocation9], 0 }
   0x9   :  { %19 = vsyncpa [#allocation4], 0 }
   0xa   :  { %21 = vsyncpa [#allocation4 + $0x1], 0  ;;  %s1499_s24 = smov 0   ;;  %s1501_s25 = smov 0  }
   0xb   :  { %s1503_s26 = smov 0   ;;  %s1505_s27 = smov 0  }
   0xc LB: > { %s1520_s28 = sadd.s32 4294967295, %s1445_s27   ;;  %s1042_s29 = sadd.s32 4294967294, %s1445_s27   ;;  %s1445_s27 = sphi %s1505_s27, %s1854_s27   ;;  %s1441_s26 = sphi %s1503_s26, %s1853_s26   ;;  %s1437_s25 = sphi %s1501_s25, %s1852_s25   ;;  %s1433_s24 = sphi %s1499_s24, %s1851_s24  }
   0xd   : > { %p47_p0 = scmp.ne.s32.totalorder %s1437_s25, %s1433_s24  ;;  %p1824_p1 = scmp.eq.s32.totalorder %s1520_s28, 0 }
   0xe   : > { %p208_p3 = scmp.eq.s32.totalorder %s1042_s29, 1  ;;  %p1043_p5 = scmp.ge.s32.totalorder %s1445_s27, 1 }
   0xf   : > { %p1529_p4 = por %p1824_p1, %p47_p0  ;;  %p215_p7 = scmp.lt.s32.totalorder %s1445_s27, 3 }
  0x10   : > { %p1534_p6 = por %p208_p3, %p47_p0  ;;  %s1447_s10 = smov [#allocation7]  }
  0x11   : > { %s1831_s30 = scalar_select %p1529_p4, 1, 0 }
  0x12   : > { %s1832_s8 = scalar_select %p1534_p6, 1, 0 }
  0x13   : > { %p1539_p8 = pnand %p1043_p5, %p215_p7  ;;  %s233_s11 = sshll.u32 %s1447_s10, 4  ;;  %s1543_s11 = int_to_ptr.vmem [resolvable:$true] %s233_s11 }
  0x14   : > { %s1448_s13 = smov [#allocation8]   ;;  %s1835_s4 = sld [smem:[#allocation17_spill]] }
  0x15   : > { %s1833_s9 = scalar_select %p1539_p8, 1, 0 }
  0x16   : > { %p1186_p9 = pneg %p1539_p8  ;;  %s246_s14 = sshll.u32 %s1448_s13, 4  ;;  %s1554_s14 = int_to_ptr.vmem [resolvable:$true] %s246_s14 }
  0x18   : > { %p1550_p11 = pnand %p1186_p9, %p1824_p1 }
  0x1a   : > { %s1251_s17 = scalar_lea.hbm %s1835_s4, 128  ;;  %p1253_p13 = pneg %p1550_p11 }
  0x1b   : > { %p1252_p12 = scmp.ne.s32.totalorder %s1835_s4, %s1251_s17  ;;  %p1258_p5 = scmp.lt.u32.totalorder %s1251_s17, %s1835_s4 }
  0x1d   : > { %p1254_p0 = pnand %p1253_p13, %p1252_p12 }
  0x1f   : > { %p1255_p3 = pneg %p1254_p0 }
  0x21   : > { %p1260_p7 = pnand %p1258_p5, %p1255_p3 }
  0x23   : > { %1263 = shalt.err (!%p1260_p7)
}
  0x24   : > { %s1264_s22 = scalar_lea.vmem %s1543_s11, 128  ;;  %p1272_p2 = scmp.lt.s32.totalorder %s1543_s11, %s1543_s11 }
  0x25   : > { %p1265_p9 = scmp.ne.s32.totalorder %s1543_s11, %s1264_s22  ;;  %p1273_p12 = scmp.lt.s32.totalorder %s1264_s22, %s1264_s22 }
  0x27   : > { %p1267_p10 = pnand %p1265_p9, %p1253_p13  ;;  %p1274_p0 = por %p1273_p12, %p1272_p2 }
  0x29   : > { %p1268_p1 = pneg %p1267_p10 }
  0x2b   : > { %p1275_p6 = pnand %p1274_p0, %p1268_p1 }
  0x2d   : > { %1278 = shalt.err (!%p1275_p6)
}
  0x2e   : > { %s1449_s23 = smov 64   ;;  %s1450_s29 = smov 4  }
  0x2f   : > { %1189 = dma.hbm_to_vmem [thread:$0]  (!%p1550_p11), %s1835_s4, 128, %s1543_s11, [#allocation6], %s1449_s23, %s1449_s23, %s1450_s29  }
  0x30   : > { %s1836_s5 = sld [smem:[#allocation18_spill]] }
  0x36   : > { %s1279_s17 = scalar_lea.hbm %s1836_s5, 1536 }
  0x37   : > { %p1280_p2 = scmp.ne.s32.totalorder %s1836_s5, %s1279_s17  ;;  %p1286_p10 = scmp.lt.u32.totalorder %s1279_s17, %s1836_s5 }
  0x39   : > { %p1282_p1 = pnand %p1280_p2, %p1253_p13 }
  0x3b   : > { %p1283_p6 = pneg %p1282_p1 }
  0x3d   : > { %p1288_p3 = pnand %p1286_p10, %p1283_p6 }
  0x3f   : > { %1291 = shalt.err (!%p1288_p3)
}
  0x40   : > { %s1292_s11 = scalar_lea.vmem %s1554_s14, 1536  ;;  %p1300_p12 = scmp.lt.s32.totalorder %s1554_s14, %s1554_s14 }
  0x41   : > { %p1293_p5 = scmp.ne.s32.totalorder %s1554_s14, %s1292_s11  ;;  %p1301_p0 = scmp.lt.s32.totalorder %s1292_s11, %s1292_s11 }
  0x43   : > { %p1295_p7 = pnand %p1293_p5, %p1253_p13  ;;  %p1302_p2 = por %p1301_p0, %p1300_p12 }
  0x45   : > { %p1296_p9 = pneg %p1295_p7 }
  0x47   : > { %p1303_p1 = pnand %p1302_p2, %p1296_p9 }
  0x49   : > { %1306 = shalt.err (!%p1303_p1)
}
  0x4a   : > { %s1451_s22 = smov 128   ;;  %s1452_s23 = smov 8  }
  0x4b   : > { %1192 = dma.hbm_to_vmem [thread:$0]  (!%p1550_p11), %s1836_s5, 1536, %s1554_s14, [#allocation9], %s1451_s22, %s1451_s22, %s1452_s23  }
  0x4c   : > { %s1609_s13 = sadd.s32 1, %s1445_s27   ;;  %s34_s16 = sadd.s32 1, %s1441_s26 }
  0x4d   : > { %s31_s15 = ssub.s32 %s1445_s27, %s1609_s13  ;;  %p41_p6 = scmp.ne.s32.totalorder %s1441_s26, %s1437_s25 }
  0x4e   : > { %p32_p13 = scmp.eq.s32.totalorder %s31_s15, 0  ;;  %p42_p10 = scmp.eq.s32.totalorder %s1445_s27, 0 }
  0x4f   : > { %p1837_p5 = scmp.eq.s32.totalorder %s1520_s28, 1  ;;  %p1206_p9 = scmp.lt.s32.totalorder %s1445_s27, 2 }
  0x50   : > { %s1618_s17 = scalar_select %p32_p13, %s1441_s26, %s34_s16  }
  0x51   : > { %p43_p3 = por %p42_p10, %p41_p6  ;;  %p1622_p7 = por %p1837_p5, %p41_p6 }
  0x52   : > { %s1628_s12 = sand.u32 1, %s1441_s26   ;;  %s1048_s19 = sshll.u32 %s1445_s27, 5 }
  0x53   : > { %s1838_s18 = scalar_select %p1622_p7, 1, 0 }
  0x54   : > { %s1047_s14 = sshll.u32 %s1628_s12, 1  ;;  %s1839_s0 = sld [smem:[#allocation16_spill]] }
  0x55   : > { %s267_s22 = scalar_lea.vmem [#allocation2], %s1047_s14  ;;  %p1639_p11 = pnand %p1206_p9, %p43_p3 }
  0x56   : > { %s274_s23 = sshll.u32 %s267_s22, 4  ;;  %s1049_s15 = sshll.u32 %s1628_s12, 2  ;;  %s1637_s23 = int_to_ptr.vmem [resolvable:$true] %s274_s23 }
  0x57   : > { %s264_s16 = scalar_lea.sflag [#allocation3], %s1628_s12  ;;  %p1309_p0 = pneg %p1639_p11 }
  0x5a   : > { %s1635_s11 = scalar_lea.hbm %s1839_s0, %s1048_s19  ;;  %s1312_s21 = scalar_lea.hbm %s1839_s0, 64 }
  0x5b   : > { %s1307_s20 = scalar_lea.hbm %s1635_s11, 32  ;;  %p1313_p13 = scmp.lt.u32.totalorder %s1635_s11, %s1839_s0 }
  0x5c   : > { %p1308_p12 = scmp.ne.s32.totalorder %s1635_s11, %s1307_s20  ;;  %p1314_p6 = scmp.lt.u32.totalorder %s1312_s21, %s1307_s20 }
  0x5d   : > { %p1316_p3 = scmp.lt.u32.totalorder %s1307_s20, %s1635_s11 }
  0x5e   : > { %p1310_p2 = pnand %p1309_p0, %p1308_p12  ;;  %p1315_p10 = por %p1314_p6, %p1313_p13 }
  0x60   : > { %p1311_p1 = pneg %p1310_p2  ;;  %p1317_p5 = por %p1316_p3, %p1315_p10 }
  0x62   : > { %p1318_p9 = pnand %p1317_p5, %p1311_p1 }
  0x64   : > { %1321 = shalt.err (!%p1318_p9)
}
  0x65   : > { %s1322_s10 = scalar_lea.vmem %s1637_s23, 32  ;;  %s1453_s14 = smov [#allocation2]  }
  0x66   : > { %p1323_p12 = scmp.ne.s32.totalorder %s1637_s23, %s1322_s10  ;;  %s1327_s19 = sshll.u32 %s1453_s14, 4  ;;  %s1328_s19 = int_to_ptr.vmem [resolvable:$false] %s1327_s19 }
  0x67   : > { %s1329_s4 = scalar_lea.vmem %s1328_s19, 64  ;;  %p1330_p4 = scmp.lt.s32.totalorder %s1637_s23, %s1328_s19 }
  0x68   : > { %p1325_p2 = pnand %p1323_p12, %p1309_p0  ;;  %p1331_p13 = scmp.lt.s32.totalorder %s1329_s4, %s1322_s10 }
  0x6a   : > { %p1326_p7 = pneg %p1325_p2  ;;  %p1332_p6 = por %p1331_p13, %p1330_p4 }
  0x6c   : > { %p1333_p10 = pnand %p1332_p6, %p1326_p7 }
  0x6e   : > { %1336 = shalt.err (!%p1333_p10)
}
  0x6f   : > { %1196 = dma.hbm_to_vmem [thread:$0]  (!%p1639_p11), %s1635_s11, 32, %s1637_s23, %s264_s16  }
  0x70   : > { %s1050_s20 = sshll.u32 %s1445_s27, 6  ;;  %s285_s10 = scalar_lea.vmem [#allocation5], %s1049_s15 }
  0x71   : > { %s1675_s14 = scalar_lea.hbm %s1817_s1, %s1050_s20  ;;  %s292_s19 = sshll.u32 %s285_s10, 4  ;;  %s293_s19 = int_to_ptr.vmem [resolvable:$true] %s292_s19 }
  0x72   : > { %s1841_s4 = sand.u32 1, %s1445_s27   ;;  %s1337_s5 = scalar_lea.hbm %s1675_s14, 64 }
  0x73   : > { %s282_s0 = scalar_lea.sflag [#allocation6], %s1841_s4  ;;  %p1338_p4 = scmp.ne.s32.totalorder %s1675_s14, %s1337_s5 }
  0x74   : > { %s1342_s16 = scalar_lea.hbm %s1817_s1, 128  ;;  %p1343_p3 = scmp.lt.u32.totalorder %s1675_s14, %s1817_s1 }
  0x75   : > { %p1340_p7 = pnand %p1338_p4, %p1309_p0  ;;  %p1344_p5 = scmp.lt.u32.totalorder %s1342_s16, %s1337_s5 }
  0x76   : > { %p1346_p12 = scmp.lt.u32.totalorder %s1337_s5, %s1675_s14 }
  0x77   : > { %p1341_p1 = pneg %p1340_p7  ;;  %p1345_p9 = por %p1344_p5, %p1343_p3 }
  0x79   : > { %p1347_p2 = por %p1346_p12, %p1345_p9 }
  0x7b   : > { %p1348_p13 = pnand %p1347_p2, %p1341_p1 }
  0x7d   : > { %1351 = shalt.err (!%p1348_p13)
}
  0x7e   : > { %s1352_s15 = scalar_lea.vmem %s293_s19, 64  ;;  %s1454_s21 = smov [#allocation5]  }
  0x7f   : > { %p1353_p6 = scmp.ne.s32.totalorder %s293_s19, %s1352_s15  ;;  %s1357_s22 = sshll.u32 %s1454_s21, 4  ;;  %s1358_s22 = int_to_ptr.vmem [resolvable:$false] %s1357_s22 }
  0x80   : > { %s1359_s10 = scalar_lea.vmem %s1358_s22, 128  ;;  %p1360_p7 = scmp.lt.s32.totalorder %s293_s19, %s1358_s22 }
  0x81   : > { %p1355_p10 = pnand %p1353_p6, %p1309_p0  ;;  %p1361_p8 = scmp.lt.s32.totalorder %s1359_s10, %s1352_s15 }
  0x83   : > { %p1356_p4 = pneg %p1355_p10  ;;  %p1362_p3 = por %p1361_p8, %p1360_p7 }
  0x85   : > { %p1363_p5 = pnand %p1362_p3, %p1356_p4 }
  0x87   : > { %1366 = shalt.err (!%p1363_p5)
}
  0x88   : > { %1199 = dma.hbm_to_vmem [thread:$0]  (!%p1639_p11), %s1675_s14, 64, %s293_s19, %s282_s0  }
  0x89   : > { %p1842_p1 = scmp.ne.s32.totalorder %s1833_s9, 0 }
  0x8a   : > { %s1703_s5 = sand.u32 (!%p1842_p1), 1, %s1437_s25   ;;  %p1843_p0 = scmp.ne.s32.totalorder (!%p1842_p1), %s1831_s30, 0 }
  0x8b   : > { %301 = sbr.rel (%p1842_p1) target bundleno = 1247 (0x4df), region = 48  ;;  %s1052_s4 = sshll.u32 (!%p1842_p1), %s1703_s5, 1 }
  0x8c   : > { %s304_s11 = scalar_lea.sflag (!%p1842_p1), [#allocation3], %s1703_s5  ;;  %s307_s23 = scalar_lea.vmem (!%p1842_p1), [#allocation2], %s1052_s4 }
  0x92   : > { %1412 = dma.done.wait (%p1843_p0), %s304_s11, 32  }
  0x93   : > { %1414 = vsyncadd (%p1843_p0), %s304_s11, 4294967264  ;;  %s312_s0 = sand.u32 1, %s1520_s28   ;;  %s1053_s9 = sshll.u32 %s1703_s5, 2 }
  0x94   : > { %s313_s29 = scalar_lea.sflag [#allocation6], %s312_s0  ;;  %s1715_s14 = scalar_lea.vmem [#allocation5], %s1053_s9 }
  0x95   : > { %1416 = dma.done.wait (%p1843_p0), %s313_s29, 64  }
  0x96   : > { %1418 = vsyncadd (%p1843_p0), %s313_s29, 4294967232  ;;  %p1844_p8 = scmp.eq.s32.totalorder %s1520_s28, 0 }
  0x98   : > { %1420 = dma.done.wait (%p1844_p8), [#allocation6], 128   ;;  %p1845_p11 = pmov %p1844_p8 }
  0x99   : > { %p1846_p9 = pmov %p1844_p8 }
  0x9a   : > { %1422 = vsyncadd (%p1845_p11), [#allocation6], 4294967168 }
  0x9b   : > { %1424 = dma.done.wait (%p1846_p9), [#allocation9], 1536   ;;  %p1847_p12 = pmov %p1844_p8 }
  0x9c   : > { %v1455_v0 = vmov 0.0   ;;  %vm1456_vm0 = vmmov 0   ;;  %vm367_vm1 = vcmask 1041408   ;;  %vm363_vm2 = vcmask 15360   ;;  %v360_v1 = vld [vmem:[%s307_s23] sm:$0x3] }
  0x9d   : > { %1426 = vsyncadd (%p1847_p12), [#allocation9], 4294965760  ;;  %1096 = vmatprep.subr.mxu1 %v1455_v0  ;;  %1098 = vmatprep.mubr.msk.f32.mxu1 %vm1456_vm0, %v1455_v0  ;;  %v362_v2 = vld [vmem:[%s1818_s2] sm:$0xf]  ;;  %v442_v4 = vld [vmem:[%s1819_s3 + $0x8] sm:$0xff]  ;;  %v1457_v5 = vmov 0.0|0.0  }
  0x9e   : > { %1108 = vmatprep.subr.mxu0 %v1455_v0  ;;  %1110 = vmatprep.mubr.msk.f32.mxu0 %vm1456_vm0, %v1455_v0  ;;  %v441_v3 = vld [vmem:[%s1819_s3] sm:$0xff]  ;;  %vm443_vm3 = vcmask 130048   ;;  %v601_v9 = vld [vmem:[#allocation8] sm:$0xff]  ;;  %v604_v13 = vld [vmem:[#allocation8 + $0x18] sm:$0xff]  ;;  %vm527_vm4 = vcmask 1043456   ;;  %vm523_vm5 = vcmask 31744  }
  0x9f   : > { %1097 = vmatpush3.msk.msra.mxu1 %vm367_vm1, %v360_v1  ;;  %v1152_v6 = vpack.c.bf16 %v442_v4, %v441_v3  ;;  %v602_v10 = vld [vmem:[#allocation8 + $0x8] sm:$0xff]  ;;  %v603_v11 = vld [vmem:[#allocation8 + $0x10] sm:$0xff]  ;;  %v518_v16 = vld [vmem:[#allocation8 + $0x20] sm:$0xff]  ;;  %vm605_vm6 = vcmask 261120   ;;  %s1069_s10 = sshll.u32 %s1520_s28, 6  ;;  %s359_s4 = scalar_lea.vmem [#allocation10], %s1053_s9 }
  0xa0   : > { %1099 = vmatmul.mubr.msk.f32.vlgmr.msra.gmra.mrb[0].mxu1 %vm363_vm2, %v362_v2  ;;  %1151 = vmatprep.subr.bf16.mxu1 %v1457_v5  ;;  %v1155_v12 = vpack.c.bf16 %v602_v10, %v601_v9  ;;  %v1158_v14 = vpack.c.bf16 %v604_v13, %v603_v11  ;;  %v361_v15 = vld [vmem:[%s1715_s14] sm:$0xf]  ;;  %v519_v17 = vld [vmem:[#allocation8 + $0x28] sm:$0xff]  ;;  %v522_v21 = vld [vmem:[#allocation7] sm:$0xf]  ;;  %s930_s11 = sshll.u32 %s359_s4, 4  ;;  %s1772_s29 = scalar_lea.hbm %s1823_s7, %s1069_s10  ;;  %s1774_s11 = int_to_ptr.vmem [resolvable:$true] %s930_s11 }
  0xa1   : > { %1105 = vmatprep.mubr.msk.f32.mxu1 %vm1456_vm0, %v1455_v0  ;;  %1153 = vmatpush3.bf16.msra.mxu1 %v1152_v6  ;;  %v1161_v22 = vpack.c.bf16 %v519_v17, %v518_v16  ;;  %v520_v23 = vld [vmem:[#allocation8 + $0x30] sm:$0xff]  ;;  %v521_v24 = vld [vmem:[#allocation8 + $0x38] sm:$0xff]  ;;  %v827_v26 = vld [vmem:[#allocation8 + $0x40] sm:$0xff]  ;;  %vm914_vm7 = vcmask 257024   ;;  %s917_s14 = scalar_lea.sflag [#allocation4], %s1703_s5  ;;  %s1367_s30 = scalar_lea.vmem %s1774_s11, 64 }
  0xa2   : > { %1154 = vmatprep.subr.bf16.mxu1 %v1457_v5  ;;  %v1164_v25 = vpack.c.bf16 %v521_v24, %v520_v23  ;;  %v828_v27 = vld [vmem:[#allocation8 + $0x48] sm:$0xff]  ;;  %v752_v31 = vld [vmem:[#allocation7 + $0x4] sm:$0xf]  ;;  %v829_v34 = vld [vmem:[#allocation8 + $0x50] sm:$0xff]  ;;  %p1368_p2 = scmp.ne.s32.totalorder %s1774_s11, %s1367_s30  ;;  %p1848_p13 = scmp.ne.s32.totalorder %s1838_s18, 0 }
  0xa3   : > { %v1167_v28 = vpack.c.bf16 %v828_v27, %v827_v26  ;;  %v830_v35 = vld [vmem:[#allocation8 + $0x58] sm:$0xff]  ;;  %v1067_v43 = vld [vmem:[%s1822_s6] ss:$0 sm:$0xff]  ;;  %s1458_s28 = smov [#allocation10]  }
  0xa4   : > { %v1170_v36 = vpack.c.bf16 %v830_v35, %v829_v34  ;;  %p1369_p6 = pnand %p1368_p2, %p1848_p13  ;;  %s1371_s9 = sshll.u32 %s1458_s28, 4  ;;  %s1372_s9 = int_to_ptr.vmem [resolvable:$false] %s1371_s9 }
  0xa5   : > { %s1373_s19 = scalar_lea.vmem %s1372_s9, 128  ;;  %p1374_p4 = scmp.lt.s32.totalorder %s1774_s11, %s1372_s9 }
  0xa6   : > { %p1370_p10 = pneg %p1369_p6  ;;  %p1375_p7 = scmp.lt.s32.totalorder %s1373_s19, %s1367_s30 }
  0xa8   : > { %p1376_p3 = por %p1375_p7, %p1374_p4 }
  0xaa   : > { %p1377_p5 = pnand %p1376_p3, %p1370_p10 }
 0x173   : > { %v437_v7 = vpop.f32.mrb[0].mxu1 }
 0x174   : > { %v1100_v8 = vpop.f32.mrb[1].mxu1  ;;  %1106 = vmatmul.mubr.msk.f32.vlgmr.msra.gmra.mrb[2].mxu1 %vm443_vm3, %v437_v7 }
 0x175   : > { %1121 = vmatprep.mubr.msk.f32.mxu1 %vm1456_vm0, %v1455_v0  ;;  %1156 = vmatpush3.bf16.msra.mxu1 %v1155_v12 }
 0x176   : > { %1157 = vmatprep.subr.bf16.mxu1 %v1457_v5 }
 0x179   : > { %1159 = vmatpush3.bf16.msra.mxu1 %v1158_v14 }
 0x17a   : > { %1135 = vmatprep.subr.mxu1 %v1455_v0 }
 0x247   : > { %v513_v18 = vpop.f32.mrb[2].mxu1 }
 0x248   : > { %v514_v19 = vadd.f32 %v513_v18, %v361_v15  ;;  %v1107_v20 = vpop.f32.mrb[3].mxu1 }
 0x24a   : > { %1109 = vmatpush3.msk.msra.mxu0 %vm527_vm4, %v514_v19 }
 0x24b   : > { %1111 = vmatmul.mubr.msk.f32.vlgmr.msra.gmra.mrb[0].mxu0 %vm523_vm5, %v522_v21  ;;  %1160 = vmatprep.subr.bf16.mxu0 %v1457_v5 }
 0x24c   : > { %1162 = vmatpush3.bf16.msra.mxu0 %v1161_v22  ;;  %1132 = vmatprep.mubr.msk.f32.mxu0 %vm1456_vm0, %v1455_v0 }
 0x24d   : > { %1163 = vmatprep.subr.bf16.mxu0 %v1457_v5 }
 0x250   : > { %1165 = vmatpush3.bf16.msra.mxu0 %v1164_v25 }
 0x251   : > { %1166 = vmatprep.subr.bf16.mxu0 %v1457_v5 }
 0x253   : > { %1133 = vmatmul.mubr.msk.f32.vlgmr.msra.gmra.mrb[2].mxu0 %vm605_vm6, %v514_v19 }
 0x254   : > { %1148 = vmatprep.mubr.msk.f32.mxu0 %vm1456_vm0, %v1455_v0  ;;  %1168 = vmatpush3.bf16.msra.mxu0 %v1167_v28 }
 0x255   : > { %1169 = vmatprep.subr.bf16.mxu0 %v1457_v5 }
 0x258   : > { %1171 = vmatpush3.bf16.msra.mxu0 %v1170_v36 }
 0x31e   : > { %v597_v29 = vpop.f32.mrb[0].mxu0 }
 0x31f   : > { %v1112_v30 = vpop.f32.mrb[1].mxu0  ;;  %1122 = vmatmul.mubr.msk.f32.vlgmr.msra.gmra.mrb[4].mxu1 %vm605_vm6, %v597_v29 }
 0x320   : > { %1136 = vmatpush3.msk.msra.mxu1 %vm527_vm4, %v514_v19  ;;  %1137 = vmatprep.mubr.msk.f32.mxu1 %vm1456_vm0, %v1455_v0 }
 0x323   : > { %1138 = vmatmul.mubr.msk.f32.vlgmr.msra.gmra.mrb[6].mxu1 %vm523_vm5, %v752_v31 }
 0x326   : > { %v747_v32 = vpop.f32.mrb[2].mxu0 }
 0x327   : > { %v1134_v33 = vpop.f32.mrb[3].mxu0 }
 0x3f2   : > { %v675_v37 = vpop.f32.mrb[4].mxu1 }
 0x3f3   : > { %v748_v38 = vadd.f32 %v747_v32, %v675_v37  ;;  %v1123_v39 = vpop.f32.mrb[5].mxu1 }
 0x3f6   : > { %v822_v40 = vpop.f32.mrb[6].mxu1 }
 0x3f7   : > { %v1139_v41 = vpop.f32.mrb[7].mxu1  ;;  %1149 = vmatmul.mubr.msk.f32.vlgmr.msra.gmra.mrb[4].mxu0 %vm605_vm6, %v822_v40 }
 0x4ca   : > { %v900_v42 = vpop.f32.mrb[4].mxu0 }
 0x4cb   : > { %v904_v44 = vadd.f32 %v900_v42, %v748_v38  ;;  %v1150_v45 = vpop.f32.mrb[5].mxu0 }
 0x4cd   : > { %v912_v46 = vadd.f32 %v1067_v43, %v904_v44 }
 0x4cf   : > { %v913_v47 = vmax.f32 %v912_v46, 0.0 }
 0x4d1   : > { %915 = vst.msk [vmem:[%s359_s4] sm:$0xf] %vm914_vm7, %v913_v47 }
 0x4d2   : > { %1380 = shalt.err (!%p1377_p5)
}
 0x4d3   : > { %s1381_s5 = scalar_lea.hbm %s1772_s29, 64  ;;  %s1385_s20 = scalar_lea.hbm %s1823_s7, 128 }
 0x4d4   : > { %p1382_p1 = scmp.ne.s32.totalorder %s1772_s29, %s1381_s5  ;;  %p1386_p11 = scmp.lt.u32.totalorder %s1772_s29, %s1823_s7 }
 0x4d5   : > { %p1387_p9 = scmp.lt.u32.totalorder %s1385_s20, %s1381_s5  ;;  %p1389_p2 = scmp.lt.u32.totalorder %s1381_s5, %s1772_s29 }
 0x4d6   : > { %p1383_p0 = pnand %p1382_p1, %p1848_p13 }
 0x4d7   : > { %p1388_p12 = por %p1387_p9, %p1386_p11 }
 0x4d8   : > { %p1384_p8 = pneg %p1383_p0 }
 0x4d9   : > { %p1390_p6 = por %p1389_p2, %p1388_p12 }
 0x4db   : > { %p1391_p10 = pnand %p1390_p6, %p1384_p8 }
 0x4dd   : > { %1394 = shalt.err (!%p1391_p10)
}
 0x4de   : > { %1184 = dma.vmem_to_hbm [thread:$0]  (%p1848_p13), %s1774_s11, 64, %s1772_s29, %s917_s14  }
 0x4df PF: > { %s942_s22 = sand.u32 1, %s1433_s24   ;;  %p1849_p4 = scmp.ne.s32.totalorder %s1832_s8, 0 }
 0x4e0   : > { %p1850_p7 = scmp.ge.s32.totalorder %s1445_s27, 2  ;;  %s943_s10 = scalar_lea.sflag [#allocation4], %s942_s22 }
 0x4e2   : > { %p1201_p3 = pnand %p1850_p7, %p1849_p4 }
 0x4e4   : > { %1428 = dma.done.wait (!%p1201_p3), %s943_s10, 64  }
 0x4e5   : > { %1430 = vsyncadd (!%p1201_p3), %s943_s10, 4294967232  ;;  %p24_p5 = scmp.ge.s32.totalorder %s1609_s13, 4   ;;  %s1851_s24 = smov %s1437_s25 }
 0x4e6   : > { %s1852_s25 = smov %s1441_s26  ;;  %s1853_s26 = smov %s1618_s17 }
 0x4e7   : > { %s1854_s27 = smov %s1609_s13  ;;  %26 = sbr.rel (!%p24_p5) target bundleno = 12 (0xc), region = 117 }
 0x4ee   :  { %948 = vsyncpa [#allocation3], 1 }
 0x4ef   :  { %950 = vsyncpa [#allocation3 + $0x1], 1 }
 0x4f0   :  { %951 = vsyncpa [#allocation6], 1 }
 0x4f1   :  { %953 = vsyncpa [#allocation6 + $0x1], 1 }
 0x4f2   :  { %954 = vsyncpa [#allocation9], 1 }
 0x4f3   :  { %955 = vsyncpa [#allocation4], 1 }
 0x4f4   :  { %957 = vsyncpa [#allocation4 + $0x1], 1 }

</bundles_post_ra>
